<compile_context>
chip_gen: v6e
topology: v6e:2x2x1
jax: 0.10.0
libtpu: 0.0.40
codegen_flags: <defaults>
</compile_context>

<pallas_src>
import functools

import jax
import jax.numpy as jnp
from jax.experimental import pallas as pl
from jax.experimental.pallas import tpu as pltpu


def calculate_class_weights(target):
    """pos_weight as in MyLoss2.__init__ (init-time; plain JAX, not the hot path)."""
    num_samples = target.shape[0]
    counts = jnp.sum(target.astype(jnp.float32), axis=0)
    return (num_samples - counts) / (counts + 1e-6)


def _bce_with_logits_kernel(pred_ref, tgt_ref, pw_ref, out_ref, acc_ref, *,
                            tile_rows, num_valid_rows, total_elems):
    i = pl.program_id(0)

    @pl.when(i == 0)
    def _():
        acc_ref[0] = jnp.float32(0.0)

    x = pred_ref[...].astype(jnp.float32)
    t = tgt_ref[...].astype(jnp.float32)
    pw = pw_ref[...].astype(jnp.float32)          # (1, N): broadcasts over rows

    # Numerically stable weighted BCE-with-logits (PyTorch formulation).
    softplus = jnp.log(1.0 + jnp.exp(-jnp.abs(x))) + jnp.maximum(-x, 0.0)
    log_weight = 1.0 + (pw - 1.0) * t
    loss = (1.0 - t) * x + log_weight * softplus

    # Mask rows that only exist because B was padded to a multiple of tile_rows.
    row = i * tile_rows + jax.lax.broadcasted_iota(jnp.int32, loss.shape, 0)
    loss = jnp.where(row < num_valid_rows, loss, 0.0)

    acc_ref[0] += jnp.sum(loss)                   # single fused reduction

    @pl.when(i == pl.num_programs(0) - 1)
    def _():
        out_ref[0, 0] = acc_ref[0] / jnp.float32(total_elems)


def _choose_tile_rows(num_rows, num_cols, itemsize):
    # Keep each input tile <= ~2 MiB: 2 inputs x 2 pipeline buffers stays well
    # inside the smallest scoped-VMEM default (16 MiB on v5e, 32 MiB v6e/v7x).
    budget_bytes = 2 * 1024 * 1024
    rows = budget_bytes // max(1, num_cols * itemsize)
    rows = max(8, (rows // 8) * 8)
    rows = min(rows, 1024)
    padded_rows = max(8, ((num_rows + 7) // 8) * 8)
    return min(rows, padded_rows)


def _bce_with_logits_pallas(predictions, target, pos_weight):
    assert predictions.shape == target.shape and predictions.ndim == 2
    num_rows, num_cols = predictions.shape
    assert pos_weight.shape == (num_cols,)

    itemsize = max(jnp.dtype(predictions.dtype).itemsize,
                   jnp.dtype(target.dtype).itemsize)
    tile_rows = _choose_tile_rows(num_rows, num_cols, itemsize)
    padded_rows = pl.cdiv(num_rows, tile_rows) * tile_rows
    if padded_rows != num_rows:
        pad = ((0, padded_rows - num_rows), (0, 0))
        predictions = jnp.pad(predictions, pad)
        target = jnp.pad(target, pad)

    grid = (padded_rows // tile_rows,)
    pos_weight_2d = pos_weight.astype(jnp.float32).reshape(1, num_cols)

    kernel = functools.partial(
        _bce_with_logits_kernel,
        tile_rows=tile_rows,
        num_valid_rows=num_rows,
        total_elems=num_rows * num_cols,
    )

    total = num_rows * num_cols
    cost = pl.CostEstimate(
        flops=12 * total,
        transcendentals=2 * total,
        bytes_accessed=(predictions.size * jnp.dtype(predictions.dtype).itemsize
                        + target.size * jnp.dtype(target.dtype).itemsize
                        + pos_weight_2d.size * 4 + 4),
    )

    out = pl.pallas_call(
        kernel,
        out_shape=jax.ShapeDtypeStruct((1, 1), jnp.float32),
        grid=grid,
        in_specs=[
            pl.BlockSpec((tile_rows, num_cols), lambda i: (i, 0)),
            pl.BlockSpec((tile_rows, num_cols), lambda i: (i, 0)),
            pl.BlockSpec((1, num_cols), lambda i: (0, 0)),
        ],
        out_specs=pl.BlockSpec(memory_space=pltpu.SMEM),
        scratch_shapes=[pltpu.SMEM((1,), jnp.float32)],
        compiler_params=pltpu.CompilerParams(
            dimension_semantics=("arbitrary",)),
        cost_estimate=cost,
    )(predictions, target, pos_weight_2d)
    return out[0, 0]


def _bce_with_logits_ref(predictions, target, pos_weight):
    x = predictions.astype(jnp.float32)
    t = target.astype(jnp.float32)
    pw = pos_weight.astype(jnp.float32)
    softplus = jnp.log(1.0 + jnp.exp(-jnp.abs(x))) + jnp.maximum(-x, 0.0)
    log_weight = 1.0 + (pw - 1.0) * t
    return jnp.mean((1.0 - t) * x + log_weight * softplus)


_PALLAS_MIN_ELEMENTS = 4096


def my_loss2_forward(predictions, target, pos_weight, *, force_pallas=False):
    """MyLoss2.forward: BCE-with-logits with per-class pos_weight, mean reduction."""
    if not force_pallas and predictions.size < _PALLAS_MIN_ELEMENTS:
        # Launch + per-step overhead dwarfs the compute below a few thousand
        # elements on every TPU generation; let XLA fuse the tiny case.
        return _bce_with_logits_ref(predictions, target, pos_weight)
    return _bce_with_logits_pallas(predictions, target, pos_weight)


if __name__ == "__main__":
    key = jax.random.PRNGKey(0)
    k_pred, k_tgt = jax.random.split(key)

    num_samples, num_classes = 8, 16       # target is [num_samples, num_classes]
    predictions = jax.random.normal(k_pred, (num_samples, num_classes),
                                    dtype=jnp.float32)
    target = (jax.random.uniform(k_tgt, (num_samples, num_classes)) > 0.5
              ).astype(jnp.float32)
    # Guarantee every class has at least one positive and one negative so the
    # init-time pos_weight values stay well conditioned for the check below.
    target = target.at[0, :].set(1.0).at[1, :].set(0.0)

    pos_weight = calculate_class_weights(target)        # MyLoss2.__init__

    out = my_loss2_forward(predictions, target, pos_weight, force_pallas=True)
    out = jax.block_until_ready(out)

    ref = _bce_with_logits_ref(predictions, target, pos_weight)
    assert jnp.allclose(out, ref, rtol=1e-5, atol=1e-5), (out, ref)

    print("KERNEL_OK")
</pallas_src>

<mosaic_0001>
module attributes {stable_mosaic.version = 11 : i64} {
  func.func @_bce_with_logits_kernel(%arg0: i32, %arg1: memref<8x16xf32, #tpu.memory_space<vmem>>, %arg2: memref<8x16xf32, #tpu.memory_space<vmem>>, %arg3: memref<1x16xf32, #tpu.memory_space<vmem>>, %arg4: memref<1x1xf32, #tpu.memory_space<smem>>, %arg5: memref<1xf32, #tpu.memory_space<smem>>) attributes {dimension_semantics = [#tpu.dimension_semantics<arbitrary>], iteration_bounds = array<i64: 1>, scalar_prefetch = 0 : i64, scratch_operands = 1 : i64, tpu.core_type = #tpu.core_type<tc>, window_params = [{transform_indices = @transform_0, window_bounds = array<i64: 8, 16>}, {transform_indices = @transform_1, window_bounds = array<i64: 8, 16>}, {pipeline_mode = #tpu.pipeline_mode<synchronous>, transform_indices = @transform_2, window_bounds = array<i64: 1, 16>}, {transform_indices = @transform_3, window_bounds = array<i64: 1, 1>}]} {
    %c0_i32 = arith.constant 0 : i32
    %0 = arith.cmpi eq, %arg0, %c0_i32 : i32
    %1 = arith.extui %0 : i1 to i32
    %c0_i32_0 = arith.constant 0 : i32
    %2 = arith.cmpi ne, %1, %c0_i32_0 : i32
    scf.if %2 {
      %cst_19 = arith.constant 0.000000e+00 : f32
      %c0_20 = arith.constant 0 : index
      %47 = memref.load %arg5[%c0_20] : memref<1xf32, #tpu.memory_space<smem>>
      memref.store %cst_19, %arg5[%c0_20] : memref<1xf32, #tpu.memory_space<smem>>
    } else {
    }
    %c0 = arith.constant 0 : index
    %c0_1 = arith.constant 0 : index
    %3 = vector.load %arg1[%c0, %c0_1] : memref<8x16xf32, #tpu.memory_space<vmem>>, vector<8x16xf32>
    %c0_2 = arith.constant 0 : index
    %c0_3 = arith.constant 0 : index
    %4 = vector.load %arg2[%c0_2, %c0_3] : memref<8x16xf32, #tpu.memory_space<vmem>>, vector<8x16xf32>
    %c0_4 = arith.constant 0 : index
    %c0_5 = arith.constant 0 : index
    %5 = vector.load %arg3[%c0_4, %c0_5] : memref<1x16xf32, #tpu.memory_space<vmem>>, vector<1x16xf32>
    %6 = math.absf %3 : vector<8x16xf32>
    %cst = arith.constant 0.000000e+00 : f32
    %7 = vector.broadcast %cst : f32 to vector<8x16xf32>
    %8 = arith.subf %7, %6 : vector<8x16xf32>
    %9 = math.exp %8 : vector<8x16xf32>
    %cst_6 = arith.constant 1.000000e+00 : f32
    %10 = vector.broadcast %cst_6 : f32 to vector<8x16xf32>
    %11 = arith.addf %10, %9 : vector<8x16xf32>
    %12 = math.log %11 : vector<8x16xf32>
    %cst_7 = arith.constant 0.000000e+00 : f32
    %13 = vector.broadcast %cst_7 : f32 to vector<8x16xf32>
    %14 = arith.subf %13, %3 : vector<8x16xf32>
    %cst_8 = arith.constant 0.000000e+00 : f32
    %15 = vector.broadcast %cst_8 : f32 to vector<8x16xf32>
    %16 = arith.maximumf %14, %15 : vector<8x16xf32>
    %17 = arith.addf %12, %16 : vector<8x16xf32>
    %cst_9 = arith.constant 1.000000e+00 : f32
    %18 = vector.broadcast %cst_9 : f32 to vector<1x16xf32>
    %19 = arith.subf %5, %18 : vector<1x16xf32>
    %20 = vector.broadcast %19 : vector<1x16xf32> to vector<8x16xf32>
    %21 = arith.mulf %20, %4 : vector<8x16xf32>
    %cst_10 = arith.constant 1.000000e+00 : f32
    %22 = vector.broadcast %cst_10 : f32 to vector<8x16xf32>
    %23 = arith.addf %22, %21 : vector<8x16xf32>
    %cst_11 = arith.constant 1.000000e+00 : f32
    %24 = vector.broadcast %cst_11 : f32 to vector<8x16xf32>
    %25 = arith.subf %24, %4 : vector<8x16xf32>
    %26 = arith.mulf %25, %3 : vector<8x16xf32>
    %27 = arith.mulf %23, %17 : vector<8x16xf32>
    %28 = arith.addf %26, %27 : vector<8x16xf32>
    %c8_i32 = arith.constant 8 : i32
    %29 = arith.muli %arg0, %c8_i32 : i32
    %30 = tpu.iota {dimensions = array<i32: 0>} : vector<8x16xi32>
    %31 = vector.broadcast %29 : i32 to vector<8x16xi32>
    %32 = arith.addi %31, %30 : vector<8x16xi32>
    %c8_i32_12 = arith.constant 8 : i32
    %33 = vector.broadcast %c8_i32_12 : i32 to vector<8x16xi32>
    %34 = arith.cmpi slt, %32, %33 : vector<8x16xi32>
    %cst_13 = arith.constant 0.000000e+00 : f32
    %35 = vector.broadcast %cst_13 : f32 to vector<8x16xf32>
    %36 = arith.select %34, %28, %35 : vector<8x16xi1>, vector<8x16xf32>
    %c0_14 = arith.constant 0 : index
    %37 = memref.load %arg5[%c0_14] : memref<1xf32, #tpu.memory_space<smem>>
    %38 = vector.shape_cast %36 : vector<8x16xf32> to vector<1x8x16xf32>
    %cst_15 = arith.constant dense<0.000000e+00> : vector<1xf32>
    %39 = vector.multi_reduction <add>, %38, %cst_15 [1, 2] : vector<1x8x16xf32> to vector<1xf32>
    %40 = vector.shape_cast %39 : vector<1xf32> to vector<1x1x1xf32>
    %41 = vector.extract %40[0, 0, 0] : f32 from vector<1x1x1xf32>
    %42 = arith.addf %37, %41 : f32
    %c0_16 = arith.constant 0 : index
    %43 = memref.load %arg5[%c0_16] : memref<1xf32, #tpu.memory_space<smem>>
    memref.store %42, %arg5[%c0_16] : memref<1xf32, #tpu.memory_space<smem>>
    %c0_i32_17 = arith.constant 0 : i32
    %44 = arith.cmpi eq, %arg0, %c0_i32_17 : i32
    %45 = arith.extui %44 : i1 to i32
    %c0_i32_18 = arith.constant 0 : i32
    %46 = arith.cmpi ne, %45, %c0_i32_18 : i32
    scf.if %46 {
      %c0_19 = arith.constant 0 : index
      %47 = memref.load %arg5[%c0_19] : memref<1xf32, #tpu.memory_space<smem>>
      %cst_20 = arith.constant 1.280000e+02 : f32
      %48 = arith.divf %47, %cst_20 : f32
      %c0_21 = arith.constant 0 : index
      %c0_22 = arith.constant 0 : index
      %49 = memref.load %arg4[%c0_21, %c0_22] : memref<1x1xf32, #tpu.memory_space<smem>>
      memref.store %48, %arg4[%c0_21, %c0_22] : memref<1x1xf32, #tpu.memory_space<smem>>
    } else {
    }
    return
  }
  func.func @transform_0(%arg0: i32) -> (i32, i32) {
    %c0_i32 = arith.constant 0 : i32
    %c0_i32_0 = arith.constant 0 : i32
    return %arg0, %c0_i32 : i32, i32
  }
  func.func @transform_1(%arg0: i32) -> (i32, i32) {
    %c0_i32 = arith.constant 0 : i32
    %c0_i32_0 = arith.constant 0 : i32
    return %arg0, %c0_i32 : i32, i32
  }
  func.func @transform_2(%arg0: i32) -> (i32, i32) {
    %c0_i32 = arith.constant 0 : i32
    %c0_i32_0 = arith.constant 0 : i32
    %c0_i32_1 = arith.constant 0 : i32
    return %c0_i32, %c0_i32_0 : i32, i32
  }
  func.func @transform_3(%arg0: i32) -> (i32, i32) {
    %c0_i32 = arith.constant 0 : i32
    %c0_i32_0 = arith.constant 0 : i32
    %c0_i32_1 = arith.constant 0 : i32
    return %c0_i32, %c0_i32_0 : i32, i32
  }
}

</mosaic_0001>

<bundles_post_ra>
// kernel: tpu_custom_call.1
= control target key start
LH: loop header
LB: loop body
LE: loop exit
PB: predicated region body
PF: predicated region fallthrough
CT: control target
= control target key end

     0   :  { %8 = vsyncpa [#allocation4], 0  ;;  %s216_s0 = inlined_call_operand.hbm [shape: f32[8,16], index: 0, kind: input, shape index: {}]   ;;  %s217_s1 = inlined_call_operand.hbm [shape: f32[8,16], index: 1, kind: input, shape index: {}]   ;;  %s218_s2 = inlined_call_operand.vmem [shape: f32[1,16], index: 2, kind: input, shape index: {}]   ;;  %s219_s3 = inlined_call_operand.hbm [shape: f32[1,1], index: 3, kind: output, shape index: {}]  }
   0x1   :  { %9 = vsyncpa [#allocation7], 0 }
   0x2   :  { %10 = vsyncpa [#allocation5], 0  ;;  %s181_s12 = smov [#allocation3]   ;;  %s182_s14 = smov [#allocation6]  }
   0x3   :  { %s17_s13 = sshll.u32 %s181_s12, 4  ;;  %s27_s15 = sshll.u32 %s182_s14, 4  ;;  %s18_s13 = int_to_ptr.vmem [resolvable:$true] %s17_s13  ;;  %s28_s15 = int_to_ptr.vmem [resolvable:$true] %s27_s15 }
   0x4   :  { %s135_s16 = scalar_lea.vmem %s18_s13, 128  ;;  %p140_p1 = scmp.lt.s32.totalorder %s18_s13, %s18_s13 }
   0x5   :  { %p136_p0 = scmp.ne.s32.totalorder %s18_s13, %s135_s16  ;;  %p141_p2 = scmp.lt.s32.totalorder %s135_s16, %s135_s16 }
   0x7   :  { %p142_p3 = por %p141_p2, %p140_p1 }
   0x9   :  { %p143_p4 = pnand %p142_p3, %p136_p0 }
   0xb   :  { %146 = shalt.err (!%p143_p4)
}
   0xc   :  { %20 = dma.hbm_to_vmem [thread:$0]  %s216_s0, 128, %s18_s13, [#allocation4]  }
   0xd   :  { %s155_s19 = scalar_lea.vmem %s28_s15, 128  ;;  %p160_p6 = scmp.lt.s32.totalorder %s28_s15, %s28_s15 }
   0xe   :  { %p156_p5 = scmp.ne.s32.totalorder %s28_s15, %s155_s19  ;;  %p161_p7 = scmp.lt.s32.totalorder %s155_s19, %s155_s19 }
  0x10   :  { %p162_p8 = por %p161_p7, %p160_p6 }
  0x12   :  { %p163_p9 = pnand %p162_p8, %p156_p5 }
  0x14   :  { %166 = shalt.err (!%p163_p9)
}
  0x15   :  { %30 = dma.hbm_to_vmem [thread:$0]  %s217_s1, 128, %s28_s15, [#allocation7]  }
  0x16   :  { %175 = dma.done.wait [#allocation4], 128  }
  0x17   :  { %176 = vsyncadd [#allocation4], 4294967168 }
  0x18   :  { %177 = dma.done.wait [#allocation7], 128  }
  0x19   :  { %178 = vsyncadd [#allocation7], 4294967168  ;;  %v45_v0 = vld [vmem:[#allocation3] sm:$0xff]  ;;  %v60_v4 = vlaneseq  ;;  %v46_v12 = vld [vmem:[#allocation6] sm:$0xff]  ;;  %vm79_vm0 = vcmask 130048   ;;  %s183_s23 = smov [#allocation8]  }
  0x1a   :  { %v48_v1 = vand.u32 2147483647, %v45_v0  ;;  %v47_v8 = vld [vmem:[%s218_s2] sm:$0x1]  ;;  %v55_v13 = vsub.f32 0.0, %v45_v0  ;;  %v67_v16 = vsub.f32 1.0, %v46_v12 }
  0x1b   :  { %v61_v7 = vshrl.u32 %v60_v4, 7  ;;  %v117_v9 = vadd.f32 -1.0, %v47_v8 }
  0x1c   :  { %v49_v2 = vsub.f32 0.0, %v48_v1  ;;  %v56_v15 = vmax.f32 %v55_v13, 0.0  ;;  %v68_v21 = vmul.f32 %v67_v16, %v45_v0 }
  0x1d   :  { %v62_v10 = vsub.s32 0, %v61_v7 }
  0x1e   :  { %v50_v3 = vmul.f32 1.442695, %v49_v2 }
  0x1f   :  { %v63_v11 = vrot.slane %v117_v9, %v62_v10 }
  0x20   :  { %123 = vpow2.f32 %v50_v3 }
  0x21   :  { %v65_v14 = vmul.f32 %v63_v11, %v46_v12 }
  0x23   :  { %v66_v19 = vadd.f32 1.0, %v65_v14 }
  0x2d   :  { %v124_v5 = vpop.eup %123 }
  0x2e   :  { %v52_v6 = vadd.f32 1.0, %v124_v5 }
  0x30   :  { %125 = vlog2.f32 %v52_v6 }
  0x3d   :  { %v126_v17 = vpop.eup %125 }
  0x3e   :  { %v54_v18 = vmul.f32 0.6931472, %v126_v17 }
  0x40   :  { %v57_v20 = vadd.f32 %v56_v15, %v54_v18 }
  0x42   :  { %v69_v22 = vmul.f32 %v66_v19, %v57_v20 }
  0x44   :  { %v70_v23 = vadd.f32 %v69_v22, %v68_v21 }
  0x46   :  { %v80_v24 = vsel %vm79_vm0, %v70_v23, 0.0 }
  0x47   :  { %81 = vadd.xlane.f32.xlu0 %v80_v24 }
  0xd0   :  { %v82_v25 = vpop.xlane.xlu0 %81 }
  0xd1   :  { %v83_v26 = vrot.slane %v82_v25, 4 }
  0xd3   :  { %v84_v27 = vadd.f32 %v83_v26, %v82_v25 }
  0xd5   :  { %v85_v28 = vrot.slane %v84_v27, 2 }
  0xd7   :  { %v86_v29 = vadd.f32 %v85_v28, %v84_v27 }
  0xd9   :  { %v87_v30 = vrot.slane %v86_v29, 1 }
  0xdb   :  { %v88_v31 = vadd.f32 %v87_v30, %v86_v29 }
  0xdd   :  { %118 = vpush %v88_v31 }
 0x10e   :  { %s119_s1 = spop %118 }
 0x10f   :  { %s99_s2 = smul.f32 0.0078125, %s119_s1 }
 0x111   :  { %101 = sst [smem:[#allocation8]] %s99_s2 }
 0x112   :  { %109 = dma.smem_to_hbm %s183_s23, 16, %s219_s3, [#allocation5]  }
 0x113   :  { %179 = dma.done.wait [#allocation5], 16  }
 0x114   :  { %180 = vsyncadd [#allocation5], 4294967280 }
 0x115   :  { %113 = sfence }
 0x116   :  { %114 = vsyncpa [#allocation4], 1 }
 0x117   :  { %115 = vsyncpa [#allocation7], 1 }
 0x118   :  { %116 = vsyncpa [#allocation5], 1 }

</bundles_post_ra>
